<compile_context>
chip_gen: v7x
topology: tpu7x:2x2x1
jax: 0.10.0
libtpu: 0.0.40
codegen_flags: <defaults>
</compile_context>

<pallas_src>
import functools

import jax
import jax.numpy as jnp
from jax import lax
from jax.experimental import pallas as pl
from jax.experimental.pallas import tpu as pltpu


def _tap_offsets(ks):
    """Causal taps (row_off, col_off) of TopLeftConv2d(center=True).

    Order is shared by: wconv packing, precomputed masks, in-kernel im2col."""
    p = ks // 2
    taps = [(ky - p, kx - p) for ky in range(p) for kx in range(ks)]  # strictly above
    taps += [(0, kx - p) for kx in range(p + 1)]                      # left, incl. center
    return taps


def _resblk_kernel(W, taps, x_ref, m_ref, s1_ref, t1_ref, w1_ref, b1_ref,
                   wconv_ref, pbias_ref, w3_ref, b3_ref, y_ref, im2col_ref):
    f32 = jnp.float32
    bf16 = jnp.bfloat16
    hid = w1_ref.shape[0]

    x = x_ref[...].astype(f32)                      # (Cin, L): batch+space on lanes
    L = x.shape[1]

    # BatchNorm2d(in_ch) (eval-mode folded scale/shift) + ReLU  -- f32 VPU math
    h = jnp.maximum(x * s1_ref[...] + t1_ref[...], 0.0)

    # Conv1x1(in_ch -> hid) with BN2 folded in; bf16 MXU inputs, f32 accumulate
    h = jnp.dot(w1_ref[...], h.astype(bf16),
                preferred_element_type=f32) + b1_ref[...]
    h = jnp.maximum(h, 0.0)                         # (hid, L) f32

    # TopLeftConv2d taps: one roll per distinct row offset (reused), then a
    # small column roll of that copy per tap.  Masks are precomputed (1, L)
    # rows (grid invariant) and broadcast-multiplied over the hid sublanes.
    # Each masked tap is written into the VMEM im2col slab, then a single
    # packed MXU contraction (K = ntaps*hid) produces the conv output.
    rolled = {0: h}
    for r in sorted({r for (r, _c) in taps if r != 0}):
        rolled[r] = pltpu.roll(h, (-r * W) % L, axis=1)
    for t, (r, c) in enumerate(taps):
        base = rolled[r]
        sh = base if c == 0 else pltpu.roll(base, (-c) % L, axis=1)
        if not (r == 0 and c == 0):                 # center tap needs no mask
            sh = sh * m_ref[pl.ds(t, 1), :]         # (1,L) mask, zero out-of-image lanes
        im2col_ref[pl.ds(t * hid, hid), :] = sh

    conv = jnp.dot(wconv_ref[...], im2col_ref[...].astype(bf16),
                   preferred_element_type=f32) + pbias_ref[...]

    # BN3 already folded; ReLU + Conv1x1(hid -> out_ch) + residual add (f32)
    h3 = jnp.maximum(conv, 0.0)
    out = jnp.dot(w3_ref[...], h3.astype(bf16),
                  preferred_element_type=f32) + b3_ref[...]
    y_ref[...] = (x + out).astype(y_ref.dtype)


def _choose_batch_block(N, S, cin, cout, hid, ntaps,
                        lane_target=4096, vmem_budget=40 * 2 ** 20):
    """Largest divisor Nb of N s.t. blocks stay lane-aligned, within the lane
    target and a conservative VMEM budget; prefer >= 2 grid steps (v7x 2 TCs)."""
    def step_bytes(nb):
        lb = nb * S
        return ((2 * (cin + cout)            # x/y blocks, double-buffered
                 + ntaps + 2 * hid           # masks + tiled pbias (+headroom)
                 + ntaps * hid               # im2col scratch slab
                 + 4 * hid) * lb * 4)        # live activation vregs (headroom)
    divs = [d for d in range(1, N + 1) if N % d == 0]
    ok = [d for d in divs
          if (d * S) % 128 == 0 and d * S <= lane_target
          and step_bytes(d) <= vmem_budget]
    if not ok:
        ok = [d for d in divs if (d * S) % 128 == 0] or [N]
    pref = [d for d in ok if N // d >= 2]
    return max(pref) if pref else max(ok)


def resblk_pallas(x_nchw, kern, ks):
    """x_nchw: (N, Cin, H, W) float32. Returns (N, Cout, H, W)."""
    N, Cin, H, W = x_nchw.shape
    Cout, hid = kern["w3"].shape
    if Cout != Cin:
        raise ValueError("residual add requires out_ch == in_ch "
                         f"(got in_ch={Cin}, out_ch={Cout})")
    S = H * W
    taps = _tap_offsets(ks)
    ntaps = len(taps)

    Nb = _choose_batch_block(N, S, Cin, Cout, hid, ntaps)
    G = N // Nb
    LB = Nb * S

    # One XLA transpose: (N, Cin, H, W) -> (Cin, N*S).  Kernel blocks are
    # lane-dense (Cin, Nb*S) slabs covering Nb whole images.
    x2 = x_nchw.reshape(N, Cin, S).transpose(1, 0, 2).reshape(Cin, N * S)

    # Grid-invariant causal boundary masks (per-image pattern, tiled to Nb
    # images).  Hoists iota/div/mod/compares out of the per-step path and
    # also guards roll wrap-around across image boundaries inside a block.
    pos = jnp.arange(S, dtype=jnp.int32)
    row_i, col_i = pos // W, pos % W
    mrows = []
    for (r, c) in taps:
        if r == 0 and c == 0:
            mrows.append(jnp.ones((S,), jnp.float32))
        else:
            mrows.append(((row_i + r >= 0) & (col_i + c >= 0)
                          & (col_i + c < W)).astype(jnp.float32))
    masks = jnp.tile(jnp.stack(mrows), (1, Nb))               # (ntaps, LB) f32

    # Matmul weights live in HBM as bf16 (half the DMA bytes, bf16 MXU);
    # per-channel BN scales/shifts and the positional bias stay f32.
    w1 = kern["w1"].astype(jnp.bfloat16)
    wconv = kern["wconv"].astype(jnp.bfloat16)
    w3 = kern["w3"].astype(jnp.bfloat16)
    pbias = jnp.tile(kern["pbias"], (1, Nb))                  # (hid, LB) f32

    params = (masks, kern["s1"], kern["t1"], w1, kern["b1"],
              wconv, pbias, w3, kern["b3"])

    const = lambda g: (0, 0)      # constant blocks: DMA'd only when index changes
    in_specs = [pl.BlockSpec((Cin, LB), lambda g: (0, g))]
    in_specs += [pl.BlockSpec(a.shape, const) for a in params]

    # VMEM limit from actual block sizes (with margin), capped so the same
    # configuration also fits v7x's 64 MiB physical VMEM.
    vmem_need = (2 * (Cin + Cout) * LB * 4
                 + 2 * sum(a.size * a.dtype.itemsize for a in params)
                 + ntaps * hid * LB * 4
                 + 4 * hid * LB * 4)
    vmem_limit = int(min(max(4 * vmem_need, 16 * 2 ** 20), 48 * 2 ** 20))

    y2 = pl.pallas_call(
        functools.partial(_resblk_kernel, W, taps),
        out_shape=jax.ShapeDtypeStruct((Cout, N * S), x_nchw.dtype),
        grid_spec=pltpu.PrefetchScalarGridSpec(
            num_scalar_prefetch=0,
            grid=(G,),
            in_specs=in_specs,
            out_specs=pl.BlockSpec((Cout, LB), lambda g: (0, g)),
            scratch_shapes=[pltpu.VMEM((ntaps * hid, LB), jnp.float32)],
        ),
        compiler_params=pltpu.CompilerParams(
            dimension_semantics=("parallel",),
            vmem_limit_bytes=vmem_limit),
    )(x2, *params)

    return y2.reshape(Cout, N, S).transpose(1, 0, 2).reshape(N, Cout, H, W)


# ----------------------------------------------------------------------------
# Deterministic parameter construction (shapes dictated by the module __init__)
# ----------------------------------------------------------------------------
def make_params(key, in_ch, hid_ch, out_ch, ks, sz):
    H, W = sz
    p = ks // 2
    eps = 1e-5
    keys = iter(jax.random.split(key, 32))

    def nrm(shape, scale):
        return (scale * jax.random.normal(next(keys), shape)).astype(jnp.float32)

    def bn_params(c):
        g = (1.0 + nrm((c,), 0.1))
        b = nrm((c,), 0.1)
        m = nrm((c,), 0.2)
        v = (0.5 + jax.random.uniform(next(keys), (c,))).astype(jnp.float32)
        return g, b, m, v

    bn1 = bn_params(in_ch)
    bn2 = bn_params(hid_ch)
    bn3 = bn_params(hid_ch)

    w1_oi = nrm((hid_ch, in_ch), 0.5)                   # Conv1x1 weight (O, I)
    b1 = nrm((hid_ch,), 0.1)
    wtop = nrm((hid_ch, hid_ch, p, ks), 0.3)            # OIHW, kernel (ks//2, ks)
    wleft = nrm((hid_ch, hid_ch, 1, p + 1), 0.3)        # OIHW, kernel (1, ks//2+1)
    pbias = nrm((hid_ch, H, W), 0.1)                    # positional bias (hid_ch, H, W)
    w3_oi = nrm((out_ch, hid_ch), 0.5)
    b3 = nrm((out_ch,), 0.1)

    raw = dict(bn1=bn1, bn2=bn2, bn3=bn3, w1_oi=w1_oi, b1=b1, wtop=wtop,
               wleft=wleft, pbias=pbias, w3_oi=w3_oi, b3=b3, eps=eps)

    def fold(g, b, m, v):
        s = g / jnp.sqrt(v + eps)
        return s, b - m * s

    s1, t1 = fold(*bn1)
    s2, t2 = fold(*bn2)
    s3, t3 = fold(*bn3)

    # Fold BN2 into the first Conv1x1 (BN applied to its output).
    w1f = w1_oi * s2[:, None]
    b1f = s2 * b1 + t2
    # Fold BN3 into the TopLeftConv weights and positional bias.
    wtop_f = wtop * s3[:, None, None, None]
    wleft_f = wleft * s3[:, None, None, None]
    pbias_f = pbias * s3[:, None, None] + t3[:, None, None]

    # Pack all causal taps into one (hid, ntaps*hid) matrix; order is shared
    # with the kernel / masks via _tap_offsets.
    tap_ws = []
    for (r, c) in _tap_offsets(ks):
        if r < 0:
            tap_ws.append(wtop_f[:, :, r + p, c + p])
        else:                                   # r == 0: left branch incl. center
            tap_ws.append(wleft_f[:, :, 0, c + p])
    wconv = jnp.concatenate(tap_ws, axis=1)     # (hid, ntaps*hid)

    kern = dict(
        s1=s1.reshape(in_ch, 1), t1=t1.reshape(in_ch, 1),
        w1=w1f, b1=b1f.reshape(hid_ch, 1),
        wconv=wconv,
        pbias=pbias_f.reshape(hid_ch, H * W),
        w3=w3_oi, b3=b3.reshape(out_ch, 1),
    )
    return raw, kern


# ----------------------------------------------------------------------------
# Pure-JAX f32 reference mirroring the PyTorch forward (NCHW), for verification
# ----------------------------------------------------------------------------
def resblk_reference(x, raw, ks):
    eps = raw["eps"]

    def bn(a, stats):
        g, b, m, v = stats
        return ((a - m[None, :, None, None]) /
                jnp.sqrt(v + eps)[None, :, None, None] *
                g[None, :, None, None] + b[None, :, None, None])

    p = ks // 2
    h = jnp.maximum(bn(x, raw["bn1"]), 0.0)
    h = jnp.einsum("nchw,oc->nohw", h, raw["w1_oi"]) + raw["b1"][None, :, None, None]
    h = jnp.maximum(bn(h, raw["bn2"]), 0.0)

    top_in = jnp.pad(h[:, :, :-1, :], ((0, 0), (0, 0), (p, 0), (p, p)))
    top = lax.conv_general_dilated(top_in, raw["wtop"], (1, 1), "VALID",
                                   dimension_numbers=("NCHW", "OIHW", "NCHW"))
    left_in = jnp.pad(h, ((0, 0), (0, 0), (0, 0), (p, 0)))
    left = lax.conv_general_dilated(left_in, raw["wleft"], (1, 1), "VALID",
                                    dimension_numbers=("NCHW", "OIHW", "NCHW"))
    h = top + left + raw["pbias"][None]

    h = jnp.maximum(bn(h, raw["bn3"]), 0.0)
    out = jnp.einsum("nchw,oc->nohw", h, raw["w3_oi"]) + raw["b3"][None, :, None, None]
    return x + out


if __name__ == "__main__":
    in_ch, hid_ch, out_ch, ks = 4, 8, 4, 3   # out_ch == in_ch (residual add)
    N, H, W = 4, 16, 16                      # N=4 -> Nb=2 per block, grid=(2,)
    sz = (H, W)

    key = jax.random.PRNGKey(0)
    kx, kp = jax.random.split(key)
    x = jax.random.normal(kx, (N, in_ch, H, W), jnp.float32)

    raw, kern = make_params(kp, in_ch, hid_ch, out_ch, ks, sz)

    y = resblk_pallas(x, kern, ks)
    y = jax.block_until_ready(y)

    y_ref = resblk_reference(x, raw, ks)
    assert y.shape == (N, out_ch, H, W)
    # Tolerance accounts for bf16 matmul inputs (f32 accumulation); structural
    # bugs (tap order / masks / BN folding) would produce O(0.3 - 3) errors.
    max_err = float(jnp.max(jnp.abs(y - y_ref)))
    assert jnp.allclose(y, y_ref, rtol=3e-2, atol=8e-2), max_err

    print("KERNEL_OK")
</pallas_src>

<mosaic_0001>
module attributes {stable_mosaic.version = 11 : i64} {
  func.func @_resblk_kernel(%arg0: i32, %arg1: memref<4x512xf32, #tpu.memory_space<vmem>>, %arg2: memref<5x512xf32, #tpu.memory_space<vmem>>, %arg3: memref<4x1xf32, #tpu.memory_space<vmem>>, %arg4: memref<4x1xf32, #tpu.memory_space<vmem>>, %arg5: memref<8x4xbf16, #tpu.memory_space<vmem>>, %arg6: memref<8x1xf32, #tpu.memory_space<vmem>>, %arg7: memref<8x40xbf16, #tpu.memory_space<vmem>>, %arg8: memref<8x512xf32, #tpu.memory_space<vmem>>, %arg9: memref<4x8xbf16, #tpu.memory_space<vmem>>, %arg10: memref<4x1xf32, #tpu.memory_space<vmem>>, %arg11: memref<4x512xf32, #tpu.memory_space<vmem>>, %arg12: memref<40x512xf32, #tpu.memory_space<vmem>>) attributes {dimension_semantics = [#tpu.dimension_semantics<parallel>], iteration_bounds = array<i64: 2>, scalar_prefetch = 0 : i64, scratch_operands = 1 : i64, tpu.core_type = #tpu.core_type<tc>, window_params = [{transform_indices = @transform_0, window_bounds = array<i64: 4, 512>}, {pipeline_mode = #tpu.pipeline_mode<synchronous>, transform_indices = @transform_1, window_bounds = array<i64: 5, 512>}, {pipeline_mode = #tpu.pipeline_mode<synchronous>, transform_indices = @transform_2, window_bounds = array<i64: 4, 1>}, {pipeline_mode = #tpu.pipeline_mode<synchronous>, transform_indices = @transform_3, window_bounds = array<i64: 4, 1>}, {pipeline_mode = #tpu.pipeline_mode<synchronous>, transform_indices = @transform_4, window_bounds = array<i64: 8, 4>}, {pipeline_mode = #tpu.pipeline_mode<synchronous>, transform_indices = @transform_5, window_bounds = array<i64: 8, 1>}, {pipeline_mode = #tpu.pipeline_mode<synchronous>, transform_indices = @transform_6, window_bounds = array<i64: 8, 40>}, {pipeline_mode = #tpu.pipeline_mode<synchronous>, transform_indices = @transform_7, window_bounds = array<i64: 8, 512>}, {pipeline_mode = #tpu.pipeline_mode<synchronous>, transform_indices = @transform_8, window_bounds = array<i64: 4, 8>}, {pipeline_mode = #tpu.pipeline_mode<synchronous>, transform_indices = @transform_9, window_bounds = array<i64: 4, 1>}, {transform_indices = @transform_10, window_bounds = array<i64: 4, 512>}]} {
    %c0 = arith.constant 0 : index
    %c0_0 = arith.constant 0 : index
    %0 = vector.load %arg1[%c0, %c0_0] : memref<4x512xf32, #tpu.memory_space<vmem>>, vector<4x512xf32>
    %c0_1 = arith.constant 0 : index
    %c0_2 = arith.constant 0 : index
    %1 = vector.load %arg3[%c0_1, %c0_2] : memref<4x1xf32, #tpu.memory_space<vmem>>, vector<4x1xf32>
    %2 = vector.broadcast %1 : vector<4x1xf32> to vector<4x512xf32>
    %3 = arith.mulf %0, %2 : vector<4x512xf32>
    %c0_3 = arith.constant 0 : index
    %c0_4 = arith.constant 0 : index
    %4 = vector.load %arg4[%c0_3, %c0_4] : memref<4x1xf32, #tpu.memory_space<vmem>>, vector<4x1xf32>
    %5 = vector.broadcast %4 : vector<4x1xf32> to vector<4x512xf32>
    %6 = arith.addf %3, %5 : vector<4x512xf32>
    %cst = arith.constant 0.000000e+00 : f32
    %7 = vector.broadcast %cst : f32 to vector<4x512xf32>
    %8 = arith.maximumf %6, %7 : vector<4x512xf32>
    %c0_5 = arith.constant 0 : index
    %c0_6 = arith.constant 0 : index
    %9 = vector.load %arg5[%c0_5, %c0_6] : memref<8x4xbf16, #tpu.memory_space<vmem>>, vector<8x4xbf16>
    %10 = arith.truncf %8 : vector<4x512xf32> to vector<4x512xbf16>
    %cst_7 = arith.constant dense<0.000000e+00> : vector<8x512xf32>
    %11 = tpu.matmul %9, %10, %cst_7 {dimension_numbers = #tpu.dot_dimension_numbers<[1], [0], [0], [1], [0, 0, 1, 1], [], []>} : vector<8x4xbf16>, vector<4x512xbf16>, vector<8x512xf32> -> vector<8x512xf32>
    %c0_8 = arith.constant 0 : index
    %c0_9 = arith.constant 0 : index
    %12 = vector.load %arg6[%c0_8, %c0_9] : memref<8x1xf32, #tpu.memory_space<vmem>>, vector<8x1xf32>
    %13 = vector.broadcast %12 : vector<8x1xf32> to vector<8x512xf32>
    %14 = arith.addf %11, %13 : vector<8x512xf32>
    %cst_10 = arith.constant 0.000000e+00 : f32
    %15 = vector.broadcast %cst_10 : f32 to vector<8x512xf32>
    %16 = arith.maximumf %14, %15 : vector<8x512xf32>
    %c16_i32 = arith.constant 16 : i32
    %17 = tpu.dynamic_rotate %16 by %c16_i32 dim 1 : vector<8x512xf32>, i32 -> vector<8x512xf32>
    %c1_i32 = arith.constant 1 : i32
    %18 = tpu.dynamic_rotate %17 by %c1_i32 dim 1 : vector<8x512xf32>, i32 -> vector<8x512xf32>
    %c0_11 = arith.constant 0 : index
    %c0_12 = arith.constant 0 : index
    %19 = vector.load %arg2[%c0_11, %c0_12] : memref<5x512xf32, #tpu.memory_space<vmem>>, vector<1x512xf32>
    %20 = vector.broadcast %19 : vector<1x512xf32> to vector<8x512xf32>
    %21 = arith.mulf %18, %20 : vector<8x512xf32>
    %c0_13 = arith.constant 0 : index
    %c0_14 = arith.constant 0 : index
    %22 = vector.load %arg12[%c0_13, %c0_14] : memref<40x512xf32, #tpu.memory_space<vmem>>, vector<8x512xf32>
    tpu.vector_store %arg12[%c0_13, %c0_14], %21 {strides = array<i32>} : memref<40x512xf32, #tpu.memory_space<vmem>>, vector<8x512xf32>,
    %c1 = arith.constant 1 : index
    %c0_15 = arith.constant 0 : index
    %23 = vector.load %arg2[%c1, %c0_15] : memref<5x512xf32, #tpu.memory_space<vmem>>, vector<1x512xf32>
    %24 = vector.broadcast %23 : vector<1x512xf32> to vector<8x512xf32>
    %25 = arith.mulf %17, %24 : vector<8x512xf32>
    %c8 = arith.constant 8 : index
    %c0_16 = arith.constant 0 : index
    %26 = vector.load %arg12[%c8, %c0_16] : memref<40x512xf32, #tpu.memory_space<vmem>>, vector<8x512xf32>
    tpu.vector_store %arg12[%c8, %c0_16], %25 {strides = array<i32>} : memref<40x512xf32, #tpu.memory_space<vmem>>, vector<8x512xf32>,
    %c511_i32 = arith.constant 511 : i32
    %27 = tpu.dynamic_rotate %17 by %c511_i32 dim 1 : vector<8x512xf32>, i32 -> vector<8x512xf32>
    %c2 = arith.constant 2 : index
    %c0_17 = arith.constant 0 : index
    %28 = vector.load %arg2[%c2, %c0_17] : memref<5x512xf32, #tpu.memory_space<vmem>>, vector<1x512xf32>
    %29 = vector.broadcast %28 : vector<1x512xf32> to vector<8x512xf32>
    %30 = arith.mulf %27, %29 : vector<8x512xf32>
    %c16 = arith.constant 16 : index
    %c0_18 = arith.constant 0 : index
    %31 = vector.load %arg12[%c16, %c0_18] : memref<40x512xf32, #tpu.memory_space<vmem>>, vector<8x512xf32>
    tpu.vector_store %arg12[%c16, %c0_18], %30 {strides = array<i32>} : memref<40x512xf32, #tpu.memory_space<vmem>>, vector<8x512xf32>,
    %c1_i32_19 = arith.constant 1 : i32
    %32 = tpu.dynamic_rotate %16 by %c1_i32_19 dim 1 : vector<8x512xf32>, i32 -> vector<8x512xf32>
    %c3 = arith.constant 3 : index
    %c0_20 = arith.constant 0 : index
    %33 = vector.load %arg2[%c3, %c0_20] : memref<5x512xf32, #tpu.memory_space<vmem>>, vector<1x512xf32>
    %34 = vector.broadcast %33 : vector<1x512xf32> to vector<8x512xf32>
    %35 = arith.mulf %32, %34 : vector<8x512xf32>
    %c24 = arith.constant 24 : index
    %c0_21 = arith.constant 0 : index
    %36 = vector.load %arg12[%c24, %c0_21] : memref<40x512xf32, #tpu.memory_space<vmem>>, vector<8x512xf32>
    tpu.vector_store %arg12[%c24, %c0_21], %35 {strides = array<i32>} : memref<40x512xf32, #tpu.memory_space<vmem>>, vector<8x512xf32>,
    %c32 = arith.constant 32 : index
    %c0_22 = arith.constant 0 : index
    %37 = vector.load %arg12[%c32, %c0_22] : memref<40x512xf32, #tpu.memory_space<vmem>>, vector<8x512xf32>
    tpu.vector_store %arg12[%c32, %c0_22], %16 {strides = array<i32>} : memref<40x512xf32, #tpu.memory_space<vmem>>, vector<8x512xf32>,
    %c0_23 = arith.constant 0 : index
    %c0_24 = arith.constant 0 : index
    %38 = vector.load %arg7[%c0_23, %c0_24] : memref<8x40xbf16, #tpu.memory_space<vmem>>, vector<8x40xbf16>
    %c0_25 = arith.constant 0 : index
    %c0_26 = arith.constant 0 : index
    %39 = vector.load %arg12[%c0_25, %c0_26] : memref<40x512xf32, #tpu.memory_space<vmem>>, vector<40x512xf32>
    %40 = arith.truncf %39 : vector<40x512xf32> to vector<40x512xbf16>
    %cst_27 = arith.constant dense<0.000000e+00> : vector<8x512xf32>
    %41 = tpu.matmul %38, %40, %cst_27 {dimension_numbers = #tpu.dot_dimension_numbers<[1], [0], [0], [1], [0, 0, 1, 1], [], []>} : vector<8x40xbf16>, vector<40x512xbf16>, vector<8x512xf32> -> vector<8x512xf32>
    %c0_28 = arith.constant 0 : index
    %c0_29 = arith.constant 0 : index
    %42 = vector.load %arg8[%c0_28, %c0_29] : memref<8x512xf32, #tpu.memory_space<vmem>>, vector<8x512xf32>
    %43 = arith.addf %41, %42 : vector<8x512xf32>
    %cst_30 = arith.constant 0.000000e+00 : f32
    %44 = vector.broadcast %cst_30 : f32 to vector<8x512xf32>
    %45 = arith.maximumf %43, %44 : vector<8x512xf32>
    %c0_31 = arith.constant 0 : index
    %c0_32 = arith.constant 0 : index
    %46 = vector.load %arg9[%c0_31, %c0_32] : memref<4x8xbf16, #tpu.memory_space<vmem>>, vector<4x8xbf16>
    %47 = arith.truncf %45 : vector<8x512xf32> to vector<8x512xbf16>
    %cst_33 = arith.constant dense<0.000000e+00> : vector<4x512xf32>
    %48 = tpu.matmul %46, %47, %cst_33 {dimension_numbers = #tpu.dot_dimension_numbers<[1], [0], [0], [1], [0, 0, 1, 1], [], []>} : vector<4x8xbf16>, vector<8x512xbf16>, vector<4x512xf32> -> vector<4x512xf32>
    %c0_34 = arith.constant 0 : index
    %c0_35 = arith.constant 0 : index
    %49 = vector.load %arg10[%c0_34, %c0_35] : memref<4x1xf32, #tpu.memory_space<vmem>>, vector<4x1xf32>
    %50 = vector.broadcast %49 : vector<4x1xf32> to vector<4x512xf32>
    %51 = arith.addf %48, %50 : vector<4x512xf32>
    %52 = arith.addf %0, %51 : vector<4x512xf32>
    %c0_36 = arith.constant 0 : index
    %c0_37 = arith.constant 0 : index
    %53 = vector.load %arg11[%c0_36, %c0_37] : memref<4x512xf32, #tpu.memory_space<vmem>>, vector<4x512xf32>
    tpu.vector_store %arg11[%c0_36, %c0_37], %52 {strides = array<i32>} : memref<4x512xf32, #tpu.memory_space<vmem>>, vector<4x512xf32>,
    return
  }
  func.func @transform_0(%arg0: i32) -> (i32, i32) {
    %c0_i32 = arith.constant 0 : i32
    %c0_i32_0 = arith.constant 0 : i32
    return %c0_i32, %arg0 : i32, i32
  }
  func.func @transform_1(%arg0: i32) -> (i32, i32) {
    %c0_i32 = arith.constant 0 : i32
    %c0_i32_0 = arith.constant 0 : i32
    %c0_i32_1 = arith.constant 0 : i32
    return %c0_i32, %c0_i32_0 : i32, i32
  }
  func.func @transform_2(%arg0: i32) -> (i32, i32) {
    %c0_i32 = arith.constant 0 : i32
    %c0_i32_0 = arith.constant 0 : i32
    %c0_i32_1 = arith.constant 0 : i32
    return %c0_i32, %c0_i32_0 : i32, i32
  }
  func.func @transform_3(%arg0: i32) -> (i32, i32) {
    %c0_i32 = arith.constant 0 : i32
    %c0_i32_0 = arith.constant 0 : i32
    %c0_i32_1 = arith.constant 0 : i32
    return %c0_i32, %c0_i32_0 : i32, i32
  }
  func.func @transform_4(%arg0: i32) -> (i32, i32) {
    %c0_i32 = arith.constant 0 : i32
    %c0_i32_0 = arith.constant 0 : i32
    %c0_i32_1 = arith.constant 0 : i32
    return %c0_i32, %c0_i32_0 : i32, i32
  }
  func.func @transform_5(%arg0: i32) -> (i32, i32) {
    %c0_i32 = arith.constant 0 : i32
    %c0_i32_0 = arith.constant 0 : i32
    %c0_i32_1 = arith.constant 0 : i32
    return %c0_i32, %c0_i32_0 : i32, i32
  }
  func.func @transform_6(%arg0: i32) -> (i32, i32) {
    %c0_i32 = arith.constant 0 : i32
    %c0_i32_0 = arith.constant 0 : i32
    %c0_i32_1 = arith.constant 0 : i32
    return %c0_i32, %c0_i32_0 : i32, i32
  }
  func.func @transform_7(%arg0: i32) -> (i32, i32) {
    %c0_i32 = arith.constant 0 : i32
    %c0_i32_0 = arith.constant 0 : i32
    %c0_i32_1 = arith.constant 0 : i32
    return %c0_i32, %c0_i32_0 : i32, i32
  }
  func.func @transform_8(%arg0: i32) -> (i32, i32) {
    %c0_i32 = arith.constant 0 : i32
    %c0_i32_0 = arith.constant 0 : i32
    %c0_i32_1 = arith.constant 0 : i32
    return %c0_i32, %c0_i32_0 : i32, i32
  }
  func.func @transform_9(%arg0: i32) -> (i32, i32) {
    %c0_i32 = arith.constant 0 : i32
    %c0_i32_0 = arith.constant 0 : i32
    %c0_i32_1 = arith.constant 0 : i32
    return %c0_i32, %c0_i32_0 : i32, i32
  }
  func.func @transform_10(%arg0: i32) -> (i32, i32) {
    %c0_i32 = arith.constant 0 : i32
    %c0_i32_0 = arith.constant 0 : i32
    return %c0_i32, %arg0 : i32, i32
  }
}

</mosaic_0001>

<bundles_post_ra>
// kernel: tpu_custom_call.1
= control target key start
LH: loop header
LB: loop body
LE: loop exit
PB: predicated region body
PF: predicated region fallthrough
CT: control target
= control target key end

     0   :  { %s1716_s0 = inlined_call_operand.hbm [shape: f32[4,1024], index: 0, kind: input, shape index: {}]   ;;  %s1717_s1 = inlined_call_operand.vmem [shape: f32[5,512], index: 1, kind: input, shape index: {}]   ;;  %s1718_s2 = inlined_call_operand.vmem [shape: f32[4,1], index: 2, kind: input, shape index: {}]   ;;  %s1719_s3 = inlined_call_operand.vmem [shape: f32[4,1], index: 3, kind: input, shape index: {}]   ;;  %s1720_s4 = inlined_call_operand.vmem [shape: bf16[8,4], index: 4, kind: input, shape index: {}]   ;;  %s1721_s5 = inlined_call_operand.vmem [shape: f32[8,1], index: 5, kind: input, shape index: {}]   ;;  %s1722_s6 = inlined_call_operand.vmem [shape: bf16[8,40], index: 6, kind: input, shape index: {}]   ;;  %s1723_s7 = inlined_call_operand.hbm [shape: f32[8,512], index: 7, kind: input, shape index: {}]   ;;  %s1724_s8 = inlined_call_operand.vmem [shape: bf16[4,8], index: 8, kind: input, shape index: {}]   ;;  %s1725_s9 = inlined_call_operand.vmem [shape: f32[4,1], index: 9, kind: input, shape index: {}]   ;;  %s1726_s10 = inlined_call_operand.hbm [shape: f32[4,1024], index: 10, kind: output, shape index: {}]  }
   0x1   :  { %1732 = sst [smem:[#allocation13_spill]] %s1723_s7 }
   0x2   :  { %15 = vsyncpa [#allocation4], 0 }
   0x3   :  { %17 = vsyncpa [#allocation4 + $0x1], 0 }
   0x4   :  { %18 = vsyncpa [#allocation7], 0 }
   0x5   :  { %19 = vsyncpa [#allocation5], 0 }
   0x6   :  { %21 = vsyncpa [#allocation5 + $0x1], 0  ;;  %s1372_s13 = smov 0   ;;  %s1374_s14 = smov 0  }
   0x7   :  { %s1376_s15 = smov 0   ;;  %s1378_s16 = smov 0  }
   0x8 LB: > { %s1393_s17 = sadd.s32 4294967295, %s1307_s16   ;;  %s1082_s18 = sadd.s32 4294967294, %s1307_s16   ;;  %s1307_s16 = sphi %s1378_s16, %s1752_s16   ;;  %s1303_s15 = sphi %s1376_s15, %s1755_s15   ;;  %s1299_s14 = sphi %s1374_s14, %s1754_s14   ;;  %s1295_s13 = sphi %s1372_s13, %s1753_s13  }
   0x9   : > { %p47_p0 = scmp.ne.s32.totalorder %s1299_s14, %s1295_s13  ;;  %p1729_p1 = scmp.eq.s32.totalorder %s1393_s17, 0 }
   0xa   : > { %p266_p3 = scmp.eq.s32.totalorder %s1082_s18, 1  ;;  %p1083_p5 = scmp.ge.s32.totalorder %s1307_s16, 1 }
   0xb   : > { %p1402_p4 = por %p1729_p1, %p47_p0  ;;  %p273_p7 = scmp.lt.s32.totalorder %s1307_s16, 3 }
   0xc   : > { %p1407_p6 = por %p266_p3, %p47_p0  ;;  %s1309_s22 = smov [#allocation6]  }
   0xd   : > { %s1733_s19 = scalar_select %p1402_p4, 1, 0 }
   0xe   : > { %s1734_s20 = scalar_select %p1407_p6, 1, 0 }
   0xf   : > { %p1412_p8 = pnand %p1083_p5, %p273_p7  ;;  %s304_s23 = sshll.u32 %s1309_s22, 4  ;;  %s305_s23 = int_to_ptr.vmem [resolvable:$true] %s304_s23 }
  0x10   : > { %s1420_s24 = sadd.s32 1, %s1307_s16   ;;  %s34_s28 = sadd.s32 1, %s1303_s15 }
  0x11   : > { %s1735_s21 = scalar_select %p1412_p8, 1, 0 }
  0x12   : > { %p1123_p10 = pneg %p1412_p8  ;;  %1736 = sst [smem:[#allocation12_spill]] %s1420_s24 }
  0x13   : > { %s31_s26 = ssub.s32 %s1307_s16, %s1420_s24  ;;  %s1739_s7 = sld [smem:[#allocation13_spill]] }
  0x14   : > { %p1424_p11 = pnand %p1123_p10, %p1729_p1  ;;  %p1430_p12 = scmp.eq.s32.totalorder %s31_s26, 0 }
  0x16   : > { %s1738_s27 = scalar_select %p1430_p12, 1, 0 }
  0x17   : > { %p1181_p3 = pneg %p1424_p11 }
  0x19   : > { %s1179_s11 = scalar_lea.hbm %s1739_s7, 512 }
  0x1a   : > { %p1180_p0 = scmp.ne.s32.totalorder %s1739_s7, %s1179_s11  ;;  %p1186_p10 = scmp.lt.u32.totalorder %s1179_s11, %s1739_s7 }
  0x1c   : > { %p1182_p5 = pnand %p1181_p3, %p1180_p0 }
  0x1e   : > { %p1183_p7 = pneg %p1182_p5 }
  0x20   : > { %p1188_p9 = pnand %p1186_p10, %p1183_p7 }
  0x22   : > { %1191 = shalt.err (!%p1188_p9)
}
  0x23   : > { %s1192_s26 = scalar_lea.vmem %s305_s23, 512  ;;  %p1200_p6 = scmp.lt.s32.totalorder %s305_s23, %s305_s23 }
  0x24   : > { %p1193_p1 = scmp.ne.s32.totalorder %s305_s23, %s1192_s26  ;;  %p1201_p4 = scmp.lt.s32.totalorder %s1192_s26, %s1192_s26 }
  0x26   : > { %p1195_p2 = pnand %p1193_p1, %p1181_p3  ;;  %p1202_p8 = por %p1201_p4, %p1200_p6 }
  0x28   : > { %p1196_p13 = pneg %p1195_p2 }
  0x2a   : > { %p1203_p12 = pnand %p1202_p8, %p1196_p13 }
  0x2c   : > { %1206 = shalt.err (!%p1203_p12)
}
  0x2d   : > { %1126 = dma.hbm_to_vmem [thread:$0]  (!%p1424_p11), %s1739_s7, 512, %s305_s23, [#allocation7]  }
  0x2e   : > { %p1740_p1 = scmp.ne.s32.totalorder %s1738_s27, 0  ;;  %p42_p2 = scmp.eq.s32.totalorder %s1307_s16, 0 }
  0x2f   : > { %p1741_p4 = scmp.ne.s32.totalorder %s1303_s15, %s1299_s14  ;;  %p1742_p6 = scmp.eq.s32.totalorder %s1393_s17, 1 }
  0x30   : > { %s1456_s24 = scalar_select %p1740_p1, %s1303_s15, %s34_s28  }
  0x31   : > { %p1464_p8 = por %p1742_p6, %p1741_p4  ;;  %p1136_p9 = scmp.lt.s32.totalorder %s1307_s16, 2 }
  0x32   : > { %s321_s11 = sand.u32 1, %s1303_s15   ;;  %p1744_p12 = pmov %p1741_p4 }
  0x33   : > { %s1086_s12 = sshll.u32 %s321_s11, 4  ;;  %s1113_s18 = sshll.u32 %s1307_s16, 8 }
  0x34   : > { %p43_p13 = por %p42_p2, %p1744_p12  ;;  %s1477_s23 = scalar_lea.hbm %s1716_s0, %s1113_s18 }
  0x35   : > { %s325_s27 = scalar_lea.vmem [#allocation3], %s1086_s12  ;;  %s322_s30 = scalar_lea.sflag [#allocation4], %s321_s11 }
  0x36   : > { %s333_s28 = sshll.u32 %s325_s27, 4  ;;  %p1479_p11 = pnand %p1136_p9, %p43_p13  ;;  %s1483_s28 = int_to_ptr.vmem [resolvable:$true] %s333_s28 }
  0x37   : > { %s1207_s7 = scalar_lea.hbm %s1477_s23, 256  ;;  %s1212_s22 = scalar_lea.hbm %s1716_s0, 512 }
  0x38   : > { %p1208_p0 = scmp.ne.s32.totalorder %s1477_s23, %s1207_s7  ;;  %p1209_p3 = pneg %p1479_p11 }
  0x39   : > { %p1213_p10 = scmp.lt.u32.totalorder %s1477_s23, %s1716_s0  ;;  %p1214_p1 = scmp.lt.u32.totalorder %s1212_s22, %s1207_s7 }
  0x3a   : > { %p1210_p5 = pnand %p1209_p3, %p1208_p0  ;;  %p1216_p4 = scmp.lt.u32.totalorder %s1207_s7, %s1477_s23 }
  0x3b   : > { %p1215_p2 = por %p1214_p1, %p1213_p10 }
  0x3c   : > { %p1211_p7 = pneg %p1210_p5 }
  0x3d   : > { %p1217_p6 = por %p1216_p4, %p1215_p2 }
  0x3f   : > { %p1218_p9 = pnand %p1217_p6, %p1211_p7 }
  0x41   : > { %1221 = shalt.err (!%p1218_p9)
}
  0x42   : > { %s1222_s11 = scalar_lea.vmem %s1483_s28, 256  ;;  %s1310_s18 = smov [#allocation3]  }
  0x43   : > { %p1223_p12 = scmp.ne.s32.totalorder %s1483_s28, %s1222_s11  ;;  %s1227_s12 = sshll.u32 %s1310_s18, 4  ;;  %s1228_s12 = int_to_ptr.vmem [resolvable:$false] %s1227_s12 }
  0x44   : > { %s1229_s26 = scalar_lea.vmem %s1228_s12, 512  ;;  %p1230_p5 = scmp.lt.s32.totalorder %s1483_s28, %s1228_s12 }
  0x45   : > { %p1225_p13 = pnand %p1223_p12, %p1209_p3  ;;  %p1231_p10 = scmp.lt.s32.totalorder %s1229_s26, %s1222_s11 }
  0x47   : > { %p1226_p0 = pneg %p1225_p13  ;;  %p1232_p1 = por %p1231_p10, %p1230_p5 }
  0x49   : > { %p1233_p2 = pnand %p1232_p1, %p1226_p0 }
  0x4b   : > { %1236 = shalt.err (!%p1233_p2)
}
  0x4c   : > { %1130 = dma.hbm_to_vmem [thread:$0]  (!%p1479_p11), %s1477_s23, 256, %s1483_s28, %s322_s30  }
  0x4d   : > { %p1746_p7 = scmp.ne.s32.totalorder %s1735_s21, 0 }
  0x4e   : > { %s1513_s7 = sand.u32 (!%p1746_p7), 1, %s1299_s14   ;;  %p1747_p3 = scmp.ne.s32.totalorder (!%p1746_p7), %s1733_s19, 0 }
  0x4f   : > { %342 = sbr.rel (%p1746_p7) target bundleno = 1176 (0x498), region = 60  ;;  %s1090_s22 = sshll.u32 (!%p1746_p7), %s1513_s7, 4 }
  0x50   : > { %s345_s27 = scalar_lea.sflag (!%p1746_p7), [#allocation4], %s1513_s7  ;;  %s348_s11 = scalar_lea.vmem (!%p1746_p7), [#allocation3], %s1090_s22 }
  0x56   : > { %1282 = dma.done.wait (%p1747_p3), %s345_s27, 256  }
  0x57   : > { %1284 = vsyncadd (%p1747_p3), %s345_s27, 4294967040  ;;  %p1748_p11 = scmp.eq.s32.totalorder %s1393_s17, 0 }
  0x59   : > { %1286 = dma.done.wait (%p1748_p11), [#allocation7], 512   ;;  %p1749_p4 = pmov %p1748_p11 }
  0x5a   : > { %v1311_v0 = vmov 0   ;;  %v394_v1 = vld [vmem:[%s1718_s2] sm:$0xf]  ;;  %v1312_v4 = vmov 839922192   ;;  %v402_v6 = vlaneseq  ;;  %v1545_v13 = vld [vmem:[%s348_s11 + $0x8] sm:$0xff] }
  0x5b   : > { %1288 = vsyncadd (%p1749_p4), [#allocation7], 4294966784  ;;  %1177 = vset.pattern.permute.xlu0 %v1311_v0  ;;  %492 = vmatprep.mubr.bf16.mxu0 %v1311_v0  ;;  %v409_v2 = vld [vmem:[%s1719_s3] sm:$0xf]  ;;  %v400_v5 = vunpack.c.l.s4 %v1312_v4  ;;  %vm447_vm0 = vcmask 1041408   ;;  %vm443_vm1 = vcmask 31744  }
  0x5c   : > { %533 = vmatprep.mubr.bf16.mxu1 %v1311_v0  ;;  %1178 = vset.pattern.permute.xlu1 %v1311_v0  ;;  %v437_v3 = vld [vmem:[%s1721_s5] sm:$0xff]  ;;  %v1540_v8 = vshrl.u32 %v402_v6, 7  ;;  %s1313_s26 = smov 16   ;;  %s1314_s27 = smov 1   ;;  %v1568_v48 = vand.u32 127, %v402_v6  ;;  %vm767_vm5 = vcmask 1043456  }
  0x5d   : > { %397 = vperm.xlu0 %1177, %v394_v1   ;;  %440 = vperm.xlu1 %1178, %v437_v3   ;;  %v401_v7 = vunpack.c.0.s8 %v400_v5  ;;  %v1543_v12 = vld [vmem:[%s348_s11] sm:$0xff]  ;;  %s1315_s11 = smov 127   ;;  %vm763_vm6 = vcmask 326656   ;;  %vm877_vm7 = vcmask 64512   ;;  %s1114_s28 = sshll.u32 %s1393_s17, 8 }
  0x5e   : > { %v426_v30 = vld [vmem:[%s1720_s4] sm:$0xf]  ;;  %vm556_vm2 = vcmp.lt.s32.totalorder %v1568_v48, 16  ;;  %v1579_v59 = vsub.s32 1, %v1540_v8  ;;  %v578_v60 = vsub.s32 0, %v1540_v8  ;;  %v1589_v63 = vsub.s32 3, %v1540_v8 }
  0x5f   : > { %v404_v9 = vsub.s32 %v401_v7, %v1540_v8  ;;  %v871_v57 = vld [vmem:[%s1725_s9] sm:$0xf]  ;;  %vm569_vm3 = vcmp.lt.s32.totalorder %v1568_v48, 1  ;;  %vm643_vm4 = vcmp.lt.s32.totalorder %v1568_v48, 127  ;;  %s388_s29 = scalar_lea.vmem [#allocation8], %s1090_s22  ;;  %s1316_s22 = smov [#allocation8]  }
  0x60   : > { %v1097_v61 = vld [vmem:[%s1717_s1 + $0x1] ss:$8 sm:$0xf]  ;;  %v574_v62 = vld [vmem:[%s1717_s1] ss:$8 sm:$0xf] }
  0x61   : > { %412 = vperm.xlu0 %1177, %v409_v2   ;;  %v1592_v2 = vsub.s32 2, %v1540_v8  ;;  %v614_v4 = vrot.slane %v1097_v61, %v1579_v59  ;;  %v610_v5 = vrot.slane %v1097_v61, %v578_v60  ;;  %v579_v6 = vrot.slane %v574_v62, %v578_v60  ;;  %s1002_s30 = sshll.u32 %s388_s29, 4  ;;  %s1674_s30 = int_to_ptr.vmem [resolvable:$true] %s1002_s30 }
  0x62   : > { %v583_v7 = vrot.slane %v574_v62, %v1579_v59  ;;  %s1237_s17 = scalar_lea.vmem %s1674_s30, 256 }
  0x63   : > { %p1238_p6 = scmp.ne.s32.totalorder %s1674_s30, %s1237_s17 }
  0x65   : > { %p1239_p9 = pnand %p1238_p6, %p1464_p8 }
  0x67   : > { %p1240_p12 = pneg %p1239_p9 }
  0xdc   : > { %v398_v10 = vpop.permute.xlu0 %397  ;;  %v441_v31 = vpop.permute.xlu1 %440 }
  0xdd   : > { %v405_v11 = vrot.slane %v398_v10, %v404_v9  ;;  %v618_v10 = vrot.slane %v1097_v61, %v1592_v2 }
  0xdf   : > { %v407_v15 = vmul.f32 %v405_v11, %v1543_v12  ;;  %v408_v16 = vmul.f32 %v405_v11, %v1545_v13 }
  0xe0   : > { %v413_v14 = vpop.permute.xlu0 %412 }
  0xe1   : > { %v420_v17 = vrot.slane %v413_v14, %v404_v9  ;;  %v622_v9 = vrot.slane %v1097_v61, %v1589_v63 }
  0xe3   : > { %v422_v18 = vadd.f32 %v420_v17, %v407_v15  ;;  %v423_v19 = vadd.f32 %v420_v17, %v408_v16  ;;  %v587_v16 = vrot.slane %v574_v62, %v1592_v2  ;;  %v591_v17 = vrot.slane %v574_v62, %v1589_v63 }
  0xe5   : > { %v424_v20 = vmax.f32 %v422_v18, 0.0  ;;  %v425_v21 = vmax.f32 %v423_v19, 0.0 }
  0xe7   : > { %v429_v22 = vcombine.high %v424_v20, %v424_v20  ;;  %v430_v23 = vcombine.high %v425_v21, %v425_v21  ;;  %v433_v24 = vpack.c.bf16 %v424_v20, %v424_v20  ;;  %v435_v25 = vpack.c.bf16 %v425_v21, %v425_v21 }
  0xe9   : > { %v434_v26 = vpack.c.bf16 %v429_v22, %v429_v22  ;;  %v436_v27 = vpack.c.bf16 %v430_v23, %v430_v23  ;;  %v449_v28 = vsel %vm447_vm0, %v433_v24, 0  ;;  %v455_v29 = vsel %vm447_vm0, %v435_v25, 0 }
  0xeb   : > { %1093 = vmatprep.subr.msk.bf16.mxu0 %vm447_vm0, %v434_v26  ;;  %1095 = vmatprep.subr.msk.bf16.mxu1 %vm447_vm0, %v436_v27 }
  0xec   : > { %461 = vmatpush1.bf16.msra.mxu0 %v449_v28  ;;  %502 = vmatpush1.bf16.msra.mxu1 %v455_v29 }
  0xef   : > { %1094 = vmatmul.mubr.msk.bf16.vlgmr.msra.gmra.mrb[0].mxu0 %vm443_vm1, %v426_v30  ;;  %1096 = vmatmul.mubr.msk.bf16.vlgmr.msra.gmra.mrb[0].mxu1 %vm443_vm1, %v426_v30 }
  0xf0   : > { %812 = vmatprep.mubr.bf16.mxu0 %v1311_v0  ;;  %853 = vmatprep.mubr.bf16.mxu1 %v1311_v0 }
 0x1c2   : > { %v494_v32 = vpop.f32.mrb[0].mxu0  ;;  %v535_v33 = vpop.f32.mrb[0].mxu1 }
 0x1c3   : > { %v495_v34 = vadd.f32 %v494_v32, %v441_v31  ;;  %v496_v35 = vpop.f32.mrb[1].mxu0  ;;  %v537_v36 = vpop.f32.mrb[1].mxu1  ;;  %v536_v41 = vadd.f32 %v535_v33, %v441_v31  ;;  %v1099_v32 = vld [vmem:[%s1717_s1 + $0x3] ss:$8 sm:$0xf] }
 0x1c4   : > { %v497_v37 = vadd.f32 %v496_v35, %v441_v31  ;;  %v498_v38 = vpop.f32.mrb[2].mxu0  ;;  %v539_v39 = vpop.f32.mrb[2].mxu1  ;;  %v538_v45 = vadd.f32 %v537_v36, %v441_v31  ;;  %v1098_v33 = vld [vmem:[%s1717_s1 + $0x2] ss:$8 sm:$0xf] }
 0x1c5   : > { %v1554_v40 = vmax.f32 %v495_v34, 0.0  ;;  %v499_v42 = vpop.f32.mrb[3].mxu0  ;;  %v540_v43 = vpop.f32.mrb[3].mxu1  ;;  %v1560_v46 = vmax.f32 %v536_v41, 0.0  ;;  %v701_v38 = vrot.slane %v1099_v32, %v1579_v59  ;;  %v654_v39 = vrot.slane %v1098_v33, %v578_v60 }
 0x1c6   : > { %v1556_v44 = vmax.f32 %v497_v37, 0.0  ;;  %v1562_v47 = vmax.f32 %v538_v45, 0.0  ;;  %v697_v41 = vrot.slane %v1099_v32, %v578_v60  ;;  %v658_v42 = vrot.slane %v1098_v33, %v1579_v59 }
 0x1c7   : > { %546 = vrot.lane.b32.xlu1 %v1554_v40, %s1313_s26 }
 0x1c8   : > { %548 = vrot.lane.b32.xlu0 %v1556_v44, %s1313_s26 }
 0x1cb   : > { %550 = vrot.lane.b32.xlu1 %v1560_v46, %s1313_s26 }
 0x1cc   : > { %552 = vrot.lane.b32.xlu0 %v1562_v47, %s1313_s26  ;;  %s1672_s26 = scalar_lea.hbm %s1726_s10, %s1114_s28 }
 0x1cf   : > { %679 = vrot.lane.b32.xlu1 %v1554_v40, %s1314_s27 }
 0x1d0   : > { %681 = vrot.lane.b32.xlu0 %v1556_v44, %s1314_s27 }
 0x239   : > { %v547_v49 = vpop.permute.xlu1 %546 }
 0x23a   : > { %v549_v50 = vpop.permute.xlu0 %548 }
 0x23b   : > { %v559_v51 = vsel %vm556_vm2, %v547_v49, %v549_v50 }
 0x23c   : > { %563 = vrot.lane.b32.xlu0 %v559_v51, %s1314_s27  ;;  %v628_v18 = vmul.f32 %v614_v4, %v559_v51 }
 0x23d   : > { %v551_v52 = vpop.permute.xlu1 %550 }
 0x23e   : > { %v553_v53 = vpop.permute.xlu0 %552  ;;  %v558_v56 = vsel %vm556_vm2, %v549_v50, %v551_v52 }
 0x23f   : > { %v560_v54 = vsel %vm556_vm2, %v553_v53, %v547_v49  ;;  %v557_v55 = vsel %vm556_vm2, %v551_v52, %v553_v53  ;;  %v629_v29 = vmul.f32 %v618_v10, %v558_v56  ;;  %v666_v49 = vrot.slane %v1098_v33, %v1589_v63 }
 0x240   : > { %561 = vrot.lane.b32.xlu1 %v560_v54, %s1314_s27  ;;  %567 = vrot.lane.b32.xlu0 %v557_v55, %s1314_s27  ;;  %v627_v19 = vmul.f32 %v610_v5, %v560_v54  ;;  %v630_v28 = vmul.f32 %v622_v9, %v557_v55 }
 0x241   : > { %v680_v1 = vpop.permute.xlu1 %679 }
 0x242   : > { %v1576_v58 = vpop.permute.xlu0 %681 }
 0x243   : > { %v689_v43 = vsel %vm569_vm3, %v680_v1, %v1576_v58 }
 0x244   : > { %565 = vrot.lane.b32.xlu1 %v558_v56, %s1314_s27  ;;  %637 = vrot.lane.b32.xlu0 %v559_v51, %s1315_s11  ;;  %v662_v51 = vrot.slane %v1098_v33, %v1592_v2 }
 0x248   : > { %635 = vrot.lane.b32.xlu1 %v560_v54, %s1315_s11  ;;  %641 = vrot.lane.b32.xlu0 %v557_v55, %s1315_s11  ;;  %v705_v55 = vrot.slane %v1099_v32, %v1592_v2 }
 0x24c   : > { %639 = vrot.lane.b32.xlu1 %v558_v56, %s1315_s11  ;;  %685 = vrot.lane.b32.xlu0 %v1562_v47, %s1314_s27  ;;  %v709_v56 = vrot.slane %v1099_v32, %v1589_v63  ;;  %s1241_s11 = sshll.u32 %s1316_s22, 4  ;;  %s1242_s11 = int_to_ptr.vmem [resolvable:$false] %s1241_s11 }
 0x24d   : > { %s1243_s21 = scalar_lea.vmem %s1242_s11, 512  ;;  %p1244_p13 = scmp.lt.s32.totalorder %s1674_s30, %s1242_s11 }
 0x24e   : > { %p1245_p0 = scmp.lt.s32.totalorder %s1243_s21, %s1237_s17 }
 0x250   : > { %683 = vrot.lane.b32.xlu1 %v1560_v46, %s1314_s27  ;;  %s988_s27 = scalar_lea.sflag [#allocation5], %s1513_s7  ;;  %p1246_p5 = por %p1245_p0, %p1244_p13 }
 0x252   : > { %p1247_p10 = pnand %p1246_p5, %p1240_p12 }
 0x254   : > { %874 = vperm.xlu1 %1178, %v871_v57   ;;  %v715_v57 = vmul.f32 %v701_v38, %v689_v43  ;;  %v866_v38 = vld [vmem:[%s1724_s8] sm:$0x3] }
 0x2ae   : > { %v564_v3 = vpop.permute.xlu0 %563 }
 0x2b2   : > { %v568_v11 = vpop.permute.xlu0 %567  ;;  %v562_v14 = vpop.permute.xlu1 %561 }
 0x2b3   : > { %v572_v15 = vsel %vm569_vm3, %v562_v14, %v564_v3  ;;  %v573_v8 = vsel %vm569_vm3, %v568_v11, %v562_v14 }
 0x2b4   : > { %v596_v20 = vmul.f32 %v579_v6, %v573_v8  ;;  %v597_v21 = vmul.f32 %v583_v7, %v572_v15  ;;  %v756_v6 = vpack.c.bf16 %v1556_v44, %v1556_v44  ;;  %v755_v7 = vpack.c.bf16 %v1554_v40, %v1554_v40 }
 0x2b5   : > { %v758_v8 = vpack.c.bf16 %v1562_v47, %v1562_v47  ;;  %v757_v40 = vpack.c.bf16 %v1560_v46, %v1560_v46  ;;  %v759_v47 = vld [vmem:[#allocation6] sm:$0xff]  ;;  %v760_v46 = vld [vmem:[#allocation6 + $0x8] sm:$0xff] }
 0x2b6   : > { %v747_v22 = vpack.c.bf16 %v627_v19, %v596_v20  ;;  %v638_v23 = vpop.permute.xlu0 %637  ;;  %v566_v24 = vpop.permute.xlu1 %565  ;;  %v748_v25 = vpack.c.bf16 %v628_v18, %v597_v21  ;;  %v769_v48 = vsel %vm767_vm5, %v755_v7, 0 }
 0x2b7   : > { %v570_v26 = vsel %vm569_vm3, %v566_v24, %v568_v11  ;;  %v571_v27 = vsel %vm569_vm3, %v564_v3, %v566_v24 }
 0x2b8   : > { %v598_v30 = vmul.f32 %v587_v16, %v571_v27  ;;  %v599_v31 = vmul.f32 %v591_v17, %v570_v26  ;;  %780 = vmatprep.subr.bf16.mxu0 %v748_v25  ;;  %v775_v16 = vsel %vm767_vm5, %v757_v40, 0  ;;  %v762_v25 = vld [vmem:[#allocation6 + $0x18] sm:$0xff] }
 0x2b9   : > { %781 = vmatpush1.bf16.msra.mxu0 %v747_v22  ;;  %v761_v22 = vld [vmem:[#allocation6 + $0x10] sm:$0xff] }
 0x2ba   : > { %v749_v34 = vpack.c.bf16 %v629_v29, %v598_v30  ;;  %v642_v35 = vpop.permute.xlu0 %641  ;;  %v636_v36 = vpop.permute.xlu1 %635  ;;  %v750_v37 = vpack.c.bf16 %v630_v28, %v599_v31 }
 0x2bb   : > { %v646_v45 = vsel %vm643_vm4, %v636_v36, %v638_v23  ;;  %v647_v62 = vsel %vm643_vm4, %v642_v35, %v636_v36 }
 0x2bc   : > { %821 = vmatprep.subr.bf16.mxu1 %v750_v37  ;;  %v671_v59 = vmul.f32 %v654_v39, %v646_v45  ;;  %v674_v9 = vmul.f32 %v666_v49, %v647_v62 }
 0x2bd   : > { %822 = vmatpush1.bf16.msra.mxu1 %v749_v34 }
 0x2be   : > { %v686_v50 = vpop.permute.xlu0 %685  ;;  %v640_v52 = vpop.permute.xlu1 %639 }
 0x2bf   : > { %v690_v53 = vsel %vm569_vm3, %v686_v50, %v680_v1  ;;  %v645_v54 = vsel %vm643_vm4, %v638_v23, %v640_v52  ;;  %v644_v3 = vsel %vm643_vm4, %v640_v52, %v642_v35 }
 0x2c0   : > { %v714_v60 = vmul.f32 %v697_v41, %v690_v53  ;;  %v672_v61 = vmul.f32 %v658_v42, %v645_v54  ;;  %v673_v10 = vmul.f32 %v662_v51, %v644_v3 }
 0x2c2   : > { %v751_v4 = vpack.c.bf16 %v714_v60, %v671_v59  ;;  %v684_v5 = vpop.permute.xlu1 %683  ;;  %v752_v1 = vpack.c.bf16 %v715_v57, %v672_v61 }
 0x2c3   : > { %v687_v2 = vsel %vm569_vm3, %v684_v5, %v686_v50  ;;  %v688_v63 = vsel %vm569_vm3, %v1576_v58, %v684_v5  ;;  %v726_v58 = vld [vmem:[%s1722_s6] sm:$0xf] }
 0x2c4   : > { %v716_v11 = vmul.f32 %v705_v55, %v688_v63  ;;  %v717_v14 = vmul.f32 %v709_v56, %v687_v2  ;;  %782 = vmatprep.subr.bf16.mxu0 %v752_v1 }
 0x2c5   : > { %783 = vmatpush1.bf16.msra.mxu0 %v751_v4 }
 0x2c6   : > { %v753_v15 = vpack.c.bf16 %v716_v11, %v673_v10  ;;  %1100 = vmatprep.subr.msk.bf16.mxu0 %vm767_vm5, %v756_v6  ;;  %v754_v44 = vpack.c.bf16 %v717_v14, %v674_v9 }
 0x2c8   : > { %823 = vmatprep.subr.bf16.mxu1 %v754_v44 }
 0x2c9   : > { %785 = vmatpush1.bf16.msra.mxu0 %v769_v48  ;;  %824 = vmatpush1.bf16.msra.mxu1 %v753_v15 }
 0x2ca   : > { %1102 = vmatprep.subr.msk.bf16.mxu1 %vm767_vm5, %v758_v8 }
 0x2cc   : > { %1101 = vmatmul.mubr.msk.bf16.vlgmr.msra.gmra.mrb[4].mxu0 %vm763_vm6, %v726_v58 }
 0x2cd   : > { %826 = vmatpush1.bf16.msra.mxu1 %v775_v16  ;;  %925 = vmatprep.mubr.bf16.mxu0 %v1311_v0 }
 0x2d0   : > { %1103 = vmatmul.mubr.msk.bf16.vlgmr.msra.gmra.mrb[4].mxu1 %vm763_vm6, %v726_v58 }
 0x2d1   : > { %966 = vmatprep.mubr.bf16.mxu1 %v1311_v0 }
 0x2d3   : > { %v875_v42 = vpop.permute.xlu1 %874 }
 0x39f   : > { %v814_v17 = vpop.f32.mrb[4].mxu0 }
 0x3a0   : > { %v815_v18 = vadd.f32 %v814_v17, %v759_v47  ;;  %v816_v19 = vpop.f32.mrb[5].mxu0 }
 0x3a1   : > { %v817_v20 = vadd.f32 %v816_v19, %v760_v46  ;;  %v818_v21 = vpop.f32.mrb[6].mxu0 }
 0x3a2   : > { %v862_v23 = vmax.f32 %v815_v18, 0.0  ;;  %v819_v24 = vpop.f32.mrb[7].mxu0 }
 0x3a3   : > { %v863_v26 = vmax.f32 %v817_v20, 0.0  ;;  %v855_v27 = vpop.f32.mrb[4].mxu1 }
 0x3a4   : > { %v867_v28 = vpack.c.bf16 %v862_v23, %v862_v23  ;;  %v856_v29 = vadd.f32 %v855_v27, %v761_v22  ;;  %v857_v30 = vpop.f32.mrb[5].mxu1 }
 0x3a5   : > { %v868_v31 = vpack.c.bf16 %v863_v26, %v863_v26  ;;  %v858_v32 = vadd.f32 %v857_v30, %v762_v25  ;;  %v859_v33 = vpop.f32.mrb[6].mxu1 }
 0x3a6   : > { %v864_v0 = vmax.f32 %v856_v29, 0.0  ;;  %v860_v34 = vpop.f32.mrb[7].mxu1  ;;  %v882_v35 = vsel %vm767_vm5, %v867_v28, 0 }
 0x3a7   : > { %v865_v36 = vmax.f32 %v858_v32, 0.0  ;;  %1104 = vmatprep.subr.msk.bf16.mxu0 %vm767_vm5, %v868_v31 }
 0x3a8   : > { %v869_v37 = vpack.c.bf16 %v864_v0, %v864_v0  ;;  %894 = vmatpush1.bf16.msra.mxu0 %v882_v35 }
 0x3a9   : > { %v870_v39 = vpack.c.bf16 %v865_v36, %v865_v36 }
 0x3aa   : > { %v888_v41 = vsel %vm767_vm5, %v869_v37, 0 }
 0x3ab   : > { %1105 = vmatmul.mubr.msk.bf16.vlgmr.msra.gmra.mrb[8].mxu0 %vm877_vm7, %v866_v38  ;;  %1106 = vmatprep.subr.msk.bf16.mxu1 %vm767_vm5, %v870_v39 }
 0x3ac   : > { %935 = vmatpush1.bf16.msra.mxu1 %v888_v41 }
 0x3af   : > { %1107 = vmatmul.mubr.msk.bf16.vlgmr.msra.gmra.mrb[8].mxu1 %vm877_vm7, %v866_v38 }
 0x47e   : > { %v927_v43 = vpop.f32.mrb[8].mxu0 }
 0x47f   : > { %v928_v45 = vadd.f32 %v927_v43, %v875_v42  ;;  %v929_v49 = vpop.f32.mrb[9].mxu0 }
 0x480   : > { %v930_v50 = vadd.f32 %v929_v49, %v875_v42  ;;  %v931_v51 = vpop.f32.mrb[10].mxu0 }
 0x481   : > { %v932_v52 = vpop.f32.mrb[11].mxu0 }
 0x482   : > { %v979_v53 = vcombine.low %v928_v45, %v930_v50  ;;  %v968_v54 = vpop.f32.mrb[8].mxu1 }
 0x483   : > { %v969_v55 = vadd.f32 %v968_v54, %v875_v42  ;;  %v970_v56 = vpop.f32.mrb[9].mxu1 }
 0x484   : > { %v983_v57 = vadd.f32 %v979_v53, %v1543_v12  ;;  %v971_v59 = vadd.f32 %v970_v56, %v875_v42  ;;  %v972_v60 = vpop.f32.mrb[10].mxu1 }
 0x485   : > { %v973_v61 = vpop.f32.mrb[11].mxu1 }
 0x486   : > { %v980_v62 = vcombine.low %v969_v55, %v971_v59  ;;  %985 = vst [vmem:[%s388_s29] sm:$0xff] %v983_v57 }
 0x488   : > { %v984_v3 = vadd.f32 %v980_v62, %v1545_v13 }
 0x48a   : > { %986 = vst [vmem:[%s388_s29 + $0x8] sm:$0xff] %v984_v3 }
 0x48b   : > { %1250 = shalt.err (!%p1247_p10)
}
 0x48c   : > { %s1251_s7 = scalar_lea.hbm %s1672_s26, 256  ;;  %s1255_s28 = scalar_lea.hbm %s1726_s10, 512 }
 0x48d   : > { %p1252_p1 = scmp.ne.s32.totalorder %s1672_s26, %s1251_s7  ;;  %p1256_p3 = scmp.lt.u32.totalorder %s1672_s26, %s1726_s10 }
 0x48e   : > { %p1257_p11 = scmp.lt.u32.totalorder %s1255_s28, %s1251_s7  ;;  %p1259_p6 = scmp.lt.u32.totalorder %s1251_s7, %s1672_s26 }
 0x48f   : > { %p1253_p2 = pnand %p1252_p1, %p1464_p8 }
 0x490   : > { %p1258_p4 = por %p1257_p11, %p1256_p3 }
 0x491   : > { %p1254_p7 = pneg %p1253_p2 }
 0x492   : > { %p1260_p9 = por %p1259_p6, %p1258_p4 }
 0x494   : > { %p1261_p12 = pnand %p1260_p9, %p1254_p7 }
 0x496   : > { %1264 = shalt.err (!%p1261_p12)
}
 0x497   : > { %1121 = dma.vmem_to_hbm [thread:$0]  (%p1464_p8), %s1674_s30, 256, %s1672_s26, %s988_s27  }
 0x498 PF: > { %s1014_s12 = sand.u32 1, %s1295_s13   ;;  %p1750_p13 = scmp.ne.s32.totalorder %s1734_s20, 0 }
 0x499   : > { %p1751_p0 = scmp.ge.s32.totalorder %s1307_s16, 2  ;;  %s1015_s17 = scalar_lea.sflag [#allocation5], %s1014_s12 }
 0x49b   : > { %p1132_p5 = pnand %p1751_p0, %p1750_p13 }
 0x49d   : > { %1290 = dma.done.wait (!%p1132_p5), %s1015_s17, 256  }
 0x49e   : > { %1292 = vsyncadd (!%p1132_p5), %s1015_s17, 4294967040  ;;  %s1752_s16 = sld [smem:[#allocation12_spill]]  ;;  %s1753_s13 = smov %s1299_s14 }
 0x49f   : > { %s1754_s14 = smov %s1303_s15  ;;  %s1755_s15 = smov %s1456_s24 }
 0x4a4   : > { %p24_p10 = scmp.ge.s32.totalorder %s1752_s16, 4  }
 0x4a6   :  { %26 = sbr.rel (!%p24_p10) target bundleno = 8 (0x8), region = 112 }
 0x4ad   :  { %1020 = vsyncpa [#allocation4], 1 }
 0x4ae   :  { %1022 = vsyncpa [#allocation4 + $0x1], 1 }
 0x4af   :  { %1023 = vsyncpa [#allocation7], 1 }
 0x4b0   :  { %1024 = vsyncpa [#allocation5], 1 }
 0x4b1   :  { %1026 = vsyncpa [#allocation5 + $0x1], 1 }

</bundles_post_ra>
